<compile_context>
chip_gen: v6e
topology: v6e:2x2x1
jax: 0.10.0
libtpu: 0.0.40
codegen_flags: <defaults>
</compile_context>

<pallas_src>
import math

import jax
import jax.numpy as jnp
from jax import lax
from jax.experimental import pallas as pl
from jax.experimental.pallas import tpu as pltpu

# TemporalEmbedding table sizes for freq='h': [month, day, weekday, hour]
# (matches x_mark columns 0..3 in the PyTorch forward).
_TEMPORAL_SIZES = (13, 32, 7, 24)
_TEMPORAL_OFFS = tuple(sum(_TEMPORAL_SIZES[:i]) for i in range(len(_TEMPORAL_SIZES)))
_N_TEMP = sum(_TEMPORAL_SIZES)  # 76


def _sinusoid_table(n, d):
    """PyTorch PositionalEmbedding / FixedEmbedding sinusoidal table (n, d)."""
    position = jnp.arange(n, dtype=jnp.float32)[:, None]
    div_term = jnp.exp(
        jnp.arange(0, d, 2, dtype=jnp.float32) * -(math.log(10000.0) / d))
    tbl = jnp.zeros((n, d), jnp.float32)
    tbl = tbl.at[:, 0::2].set(jnp.sin(position * div_term))
    tbl = tbl.at[:, 1::2].set(jnp.cos(position * div_term))
    return tbl


def make_kernel(with_temporal):
    offs = _TEMPORAL_OFFS
    n_temp = _N_TEMP

    if with_temporal:
        def kernel(act_ref, mark_ref, w_conv_ref, w_temp_ref, pos_bias_ref, out_ref):
            tl = out_ref.shape[0]

            # ---- TokenEmbedding: circular Conv1d as one (TL, 3*c_in) @ (3*c_in, D) ----
            val = jnp.dot(act_ref[...], w_conv_ref[...],
                          preferred_element_type=jnp.float32)          # (TL, D) on the MXU

            # ---- TemporalEmbedding: one-hot lookup as one (TL, 76) @ (76, D) matmul ----
            marks = mark_ref[...]                                       # (TL, 4) int32
            lanes = lax.broadcasted_iota(jnp.int32, (tl, n_temp), 1)    # lane index 0..75
            onehot = (lanes == marks[:, 0:1] + offs[0])
            for c in range(1, len(offs)):
                onehot = onehot | (lanes == marks[:, c:c + 1] + offs[c])
            temporal = jnp.dot(onehot.astype(jnp.float32), w_temp_ref[...],
                               preferred_element_type=jnp.float32)      # (TL, D)

            # ---- + (positional embedding + conv bias), precomputed constant ----
            out_ref[...] = (val + temporal + pos_bias_ref[...]).astype(out_ref.dtype)
    else:
        def kernel(act_ref, w_conv_ref, pos_bias_ref, out_ref):
            val = jnp.dot(act_ref[...], w_conv_ref[...],
                          preferred_element_type=jnp.float32)
            out_ref[...] = (val + pos_bias_ref[...]).astype(out_ref.dtype)

    return kernel


def data_embedding(x, x_mark, params, *, tile_l=None):
    """DataEmbedding forward. x: (B, L, c_in) f32, x_mark: (B, L, 4) int (or None)."""
    B, L, c_in = x.shape
    Kc = 3 * c_in
    D = params["w_conv"].shape[1]

    # Stack the 3 circular conv taps lane-dense in the wrapper (tiny c_in-wide traffic,
    # avoids cross-tile halos and in-kernel concatenate/relayout).
    x = x.astype(jnp.float32)
    act = jnp.concatenate(
        [jnp.roll(x, 1, axis=1), x, jnp.roll(x, -1, axis=1)], axis=-1)   # (B, L, 3*c_in)

    # Positional embedding + conv bias folded into one (L, D) constant.
    pos_bias = (params["pos_table"][:L] + params["b_conv"][None, :]).astype(jnp.float32)

    if tile_l is None:
        tile_l = L if L <= 512 else 512          # multiple of 8 (or full L) by construction
    n_lt = pl.cdiv(L, tile_l)

    with_temporal = x_mark is not None

    # Grid: L-tiles OUTER, batch INNER -> pos_bias block index only changes with the
    # outer axis, so Pallas re-uses it across the batch loop (fetched once per L-tile).
    grid = (n_lt, B)

    act_spec = pl.BlockSpec((None, tile_l, Kc), lambda i, b: (b, i, 0))
    wconv_spec = pl.BlockSpec((Kc, D), lambda i, b: (0, 0))
    pos_spec = pl.BlockSpec((tile_l, D), lambda i, b: (i, 0))
    out_spec = pl.BlockSpec((None, tile_l, D), lambda i, b: (b, i, 0))

    if with_temporal:
        marks = x_mark.astype(jnp.int32)
        in_specs = [
            act_spec,
            pl.BlockSpec((None, tile_l, len(_TEMPORAL_SIZES)), lambda i, b: (b, i, 0)),
            wconv_spec,
            pl.BlockSpec((_N_TEMP, D), lambda i, b: (0, 0)),
            pos_spec,
        ]
        args = (act, marks, params["w_conv"], params["w_temp"], pos_bias)
        flops = 2 * B * L * (Kc + _N_TEMP) * D
        bytes_accessed = 4 * (B * L * (Kc + len(_TEMPORAL_SIZES))       # act + marks reads
                              + B * L * D                               # output writes
                              + L * D                                   # pos+bias (once per L-tile)
                              + (Kc + _N_TEMP) * D)                     # weights (once)
    else:
        in_specs = [act_spec, wconv_spec, pos_spec]
        args = (act, params["w_conv"], pos_bias)
        flops = 2 * B * L * Kc * D
        bytes_accessed = 4 * (B * L * Kc + B * L * D + L * D + Kc * D)

    return pl.pallas_call(
        make_kernel(with_temporal),
        out_shape=jax.ShapeDtypeStruct((B, L, D), jnp.float32),
        grid_spec=pltpu.PrefetchScalarGridSpec(
            num_scalar_prefetch=0,
            grid=grid,
            in_specs=in_specs,
            out_specs=out_spec,
        ),
        compiler_params=pltpu.CompilerParams(
            dimension_semantics=("parallel", "parallel"),
            vmem_limit_bytes=32 * 1024 * 1024,
        ),
        cost_estimate=pl.CostEstimate(flops=flops, transcendentals=0,
                                      bytes_accessed=bytes_accessed),
    )(*args)


def init_params(key, c_in, d_model, max_len=5000):
    k_w, k_b = jax.random.split(key)
    # nn.Conv1d(c_in, d_model, 3) weight: kaiming_normal_(fan_in, leaky_relu) -> std = sqrt(2)/sqrt(3*c_in)
    fan_in = 3 * c_in
    std = math.sqrt(2.0) / math.sqrt(fan_in)
    w_torch = std * jax.random.normal(k_w, (d_model, c_in, 3), jnp.float32)
    # Stack as (3*c_in, D): rows ordered [tap k=0 (x[t-1]) c=0..c_in-1, tap k=1, tap k=2].
    w_conv = jnp.transpose(w_torch, (2, 1, 0)).reshape(3 * c_in, d_model)
    bound = 1.0 / math.sqrt(fan_in)
    b_conv = jax.random.uniform(k_b, (d_model,), jnp.float32, -bound, bound)
    pos_table = _sinusoid_table(max_len, d_model)                       # PositionalEmbedding.pe
    w_temp = jnp.concatenate(
        [_sinusoid_table(n, d_model) for n in _TEMPORAL_SIZES], axis=0)  # FixedEmbedding tables
    return dict(w_conv=w_conv, b_conv=b_conv, pos_table=pos_table, w_temp=w_temp)


def reference(x, x_mark, params):
    """Pure-JAX reference mirroring the PyTorch DataEmbedding forward (eval mode)."""
    B, L, c_in = x.shape
    W = params["w_conv"]
    W0, W1, W2 = W[:c_in], W[c_in:2 * c_in], W[2 * c_in:]
    val = (jnp.roll(x, 1, axis=1) @ W0 + x @ W1 + jnp.roll(x, -1, axis=1) @ W2
           + params["b_conv"])
    pos = params["pos_table"][:L]
    out = val + pos[None]
    if x_mark is None:
        return out
    xm = x_mark.astype(jnp.int32)
    temporal = 0.0
    for c, (off, size) in enumerate(zip(_TEMPORAL_OFFS, _TEMPORAL_SIZES)):
        temporal = temporal + params["w_temp"][off:off + size][xm[..., c]]
    return out + temporal


if __name__ == "__main__":
    B, L, c_in, d_model = 2, 16, 7, 128          # lane-dense d_model for the demo
    key = jax.random.PRNGKey(0)
    k_x, k_m, k_p = jax.random.split(key, 3)
    x = jax.random.normal(k_x, (B, L, c_in), jnp.float32)
    km = jax.random.split(k_m, 4)
    x_mark = jnp.stack(
        [jax.random.randint(km[i], (B, L), 0, hi)
         for i, hi in enumerate(_TEMPORAL_SIZES)], axis=-1).astype(jnp.int32)
    params = init_params(k_p, c_in, d_model)

    # Path with temporal marks.
    out = jax.block_until_ready(data_embedding(x, x_mark, params))
    ref = reference(x, x_mark, params)
    assert out.shape == (B, L, d_model)
    assert jnp.allclose(out, ref, atol=1e-5, rtol=1e-5), (
        f"mismatch vs reference, max abs diff = {float(jnp.max(jnp.abs(out - ref)))}")

    # Path with x_mark=None (value + positional only).
    out_nm = jax.block_until_ready(data_embedding(x, None, params))
    ref_nm = reference(x, None, params)
    assert jnp.allclose(out_nm, ref_nm, atol=1e-5, rtol=1e-5), (
        f"mismatch (no-mark) vs reference, max abs diff = "
        f"{float(jnp.max(jnp.abs(out_nm - ref_nm)))}")

    print("KERNEL_OK")
</pallas_src>

<mosaic_0001>
module attributes {stable_mosaic.version = 11 : i64} {
  func.func @kernel(%arg0: i32, %arg1: i32, %arg2: memref<1x16x21xf32, #tpu.memory_space<vmem>>, %arg3: memref<1x16x4xi32, #tpu.memory_space<vmem>>, %arg4: memref<21x128xf32, #tpu.memory_space<vmem>>, %arg5: memref<76x128xf32, #tpu.memory_space<vmem>>, %arg6: memref<16x128xf32, #tpu.memory_space<vmem>>, %arg7: memref<1x16x128xf32, #tpu.memory_space<vmem>>) attributes {dimension_semantics = [#tpu.dimension_semantics<parallel>, #tpu.dimension_semantics<parallel>], iteration_bounds = array<i64: 1, 2>, scalar_prefetch = 0 : i64, scratch_operands = 0 : i64, tpu.core_type = #tpu.core_type<tc>, window_params = [{transform_indices = @transform_0, window_bounds = array<i64: 1, 16, 21>}, {transform_indices = @transform_1, window_bounds = array<i64: 1, 16, 4>}, {pipeline_mode = #tpu.pipeline_mode<synchronous>, transform_indices = @transform_2, window_bounds = array<i64: 21, 128>}, {pipeline_mode = #tpu.pipeline_mode<synchronous>, transform_indices = @transform_3, window_bounds = array<i64: 76, 128>}, {transform_indices = @transform_4, window_bounds = array<i64: 16, 128>}, {transform_indices = @transform_5, window_bounds = array<i64: 1, 16, 128>}]} {
    %c0 = arith.constant 0 : index
    %c0_0 = arith.constant 0 : index
    %c0_1 = arith.constant 0 : index
    %0 = vector.load %arg2[%c0, %c0_0, %c0_1] : memref<1x16x21xf32, #tpu.memory_space<vmem>>, vector<1x16x21xf32>
    %1 = vector.shape_cast %0 : vector<1x16x21xf32> to vector<16x21xf32>
    %c0_2 = arith.constant 0 : index
    %c0_3 = arith.constant 0 : index
    %2 = vector.load %arg4[%c0_2, %c0_3] : memref<21x128xf32, #tpu.memory_space<vmem>>, vector<21x128xf32>
    %cst = arith.constant dense<0.000000e+00> : vector<16x128xf32>
    %3 = tpu.matmul %1, %2, %cst {dimension_numbers = #tpu.dot_dimension_numbers<[1], [0], [0], [1], [0, 0, 1, 1], [], []>} : vector<16x21xf32>, vector<21x128xf32>, vector<16x128xf32> -> vector<16x128xf32>
    %c0_4 = arith.constant 0 : index
    %c0_5 = arith.constant 0 : index
    %c0_6 = arith.constant 0 : index
    %4 = vector.load %arg3[%c0_4, %c0_5, %c0_6] : memref<1x16x4xi32, #tpu.memory_space<vmem>>, vector<1x16x4xi32>
    %5 = vector.shape_cast %4 : vector<1x16x4xi32> to vector<16x4xi32>
    %6 = tpu.iota {dimensions = array<i32: 1>} : vector<16x76xi32>
    %7 = vector.extract_strided_slice %5 {offsets = [0, 0], sizes = [16, 1], strides = [1, 1]} : vector<16x4xi32> to vector<16x1xi32>
    %c0_i32 = arith.constant 0 : i32
    %8 = vector.broadcast %c0_i32 : i32 to vector<16x1xi32>
    %9 = arith.addi %7, %8 : vector<16x1xi32>
    %10 = vector.broadcast %9 : vector<16x1xi32> to vector<16x76xi32>
    %11 = arith.cmpi eq, %6, %10 : vector<16x76xi32>
    %12 = vector.extract_strided_slice %5 {offsets = [0, 1], sizes = [16, 1], strides = [1, 1]} : vector<16x4xi32> to vector<16x1xi32>
    %c13_i32 = arith.constant 13 : i32
    %13 = vector.broadcast %c13_i32 : i32 to vector<16x1xi32>
    %14 = arith.addi %12, %13 : vector<16x1xi32>
    %15 = vector.broadcast %14 : vector<16x1xi32> to vector<16x76xi32>
    %16 = arith.cmpi eq, %6, %15 : vector<16x76xi32>
    %17 = arith.ori %11, %16 : vector<16x76xi1>
    %18 = vector.extract_strided_slice %5 {offsets = [0, 2], sizes = [16, 1], strides = [1, 1]} : vector<16x4xi32> to vector<16x1xi32>
    %c45_i32 = arith.constant 45 : i32
    %19 = vector.broadcast %c45_i32 : i32 to vector<16x1xi32>
    %20 = arith.addi %18, %19 : vector<16x1xi32>
    %21 = vector.broadcast %20 : vector<16x1xi32> to vector<16x76xi32>
    %22 = arith.cmpi eq, %6, %21 : vector<16x76xi32>
    %23 = arith.ori %17, %22 : vector<16x76xi1>
    %24 = vector.extract_strided_slice %5 {offsets = [0, 3], sizes = [16, 1], strides = [1, 1]} : vector<16x4xi32> to vector<16x1xi32>
    %c52_i32 = arith.constant 52 : i32
    %25 = vector.broadcast %c52_i32 : i32 to vector<16x1xi32>
    %26 = arith.addi %24, %25 : vector<16x1xi32>
    %27 = vector.broadcast %26 : vector<16x1xi32> to vector<16x76xi32>
    %28 = arith.cmpi eq, %6, %27 : vector<16x76xi32>
    %29 = arith.ori %23, %28 : vector<16x76xi1>
    %30 = arith.extui %29 : vector<16x76xi1> to vector<16x76xi32>
    %31 = arith.sitofp %30 : vector<16x76xi32> to vector<16x76xf32>
    %c0_7 = arith.constant 0 : index
    %c0_8 = arith.constant 0 : index
    %32 = vector.load %arg5[%c0_7, %c0_8] : memref<76x128xf32, #tpu.memory_space<vmem>>, vector<76x128xf32>
    %cst_9 = arith.constant dense<0.000000e+00> : vector<16x128xf32>
    %33 = tpu.matmul %31, %32, %cst_9 {dimension_numbers = #tpu.dot_dimension_numbers<[1], [0], [0], [1], [0, 0, 1, 1], [], []>} : vector<16x76xf32>, vector<76x128xf32>, vector<16x128xf32> -> vector<16x128xf32>
    %34 = arith.addf %3, %33 : vector<16x128xf32>
    %c0_10 = arith.constant 0 : index
    %c0_11 = arith.constant 0 : index
    %35 = vector.load %arg6[%c0_10, %c0_11] : memref<16x128xf32, #tpu.memory_space<vmem>>, vector<16x128xf32>
    %36 = arith.addf %34, %35 : vector<16x128xf32>
    %c0_12 = arith.constant 0 : index
    %c0_13 = arith.constant 0 : index
    %c0_14 = arith.constant 0 : index
    %37 = vector.load %arg7[%c0_12, %c0_13, %c0_14] : memref<1x16x128xf32, #tpu.memory_space<vmem>>, vector<1x16x128xf32>
    %38 = vector.shape_cast %37 : vector<1x16x128xf32> to vector<16x128xf32>
    %39 = vector.shape_cast %36 : vector<16x128xf32> to vector<1x16x128xf32>
    tpu.vector_store %arg7[%c0_12, %c0_13, %c0_14], %39 {strides = array<i32>} : memref<1x16x128xf32, #tpu.memory_space<vmem>>, vector<1x16x128xf32>,
    return
  }
  func.func @transform_0(%arg0: i32, %arg1: i32) -> (i32, i32, i32) {
    %c0_i32 = arith.constant 0 : i32
    %c0_i32_0 = arith.constant 0 : i32
    return %arg1, %arg0, %c0_i32 : i32, i32, i32
  }
  func.func @transform_1(%arg0: i32, %arg1: i32) -> (i32, i32, i32) {
    %c0_i32 = arith.constant 0 : i32
    %c0_i32_0 = arith.constant 0 : i32
    return %arg1, %arg0, %c0_i32 : i32, i32, i32
  }
  func.func @transform_2(%arg0: i32, %arg1: i32) -> (i32, i32) {
    %c0_i32 = arith.constant 0 : i32
    %c0_i32_0 = arith.constant 0 : i32
    %c0_i32_1 = arith.constant 0 : i32
    return %c0_i32, %c0_i32_0 : i32, i32
  }
  func.func @transform_3(%arg0: i32, %arg1: i32) -> (i32, i32) {
    %c0_i32 = arith.constant 0 : i32
    %c0_i32_0 = arith.constant 0 : i32
    %c0_i32_1 = arith.constant 0 : i32
    return %c0_i32, %c0_i32_0 : i32, i32
  }
  func.func @transform_4(%arg0: i32, %arg1: i32) -> (i32, i32) {
    %c0_i32 = arith.constant 0 : i32
    %c0_i32_0 = arith.constant 0 : i32
    return %arg0, %c0_i32 : i32, i32
  }
  func.func @transform_5(%arg0: i32, %arg1: i32) -> (i32, i32, i32) {
    %c0_i32 = arith.constant 0 : i32
    %c0_i32_0 = arith.constant 0 : i32
    return %arg1, %arg0, %c0_i32 : i32, i32, i32
  }
}

</mosaic_0001>

<bundles_post_ra>
// kernel: tpu_custom_call.1
= control target key start
LH: loop header
LB: loop body
LE: loop exit
PB: predicated region body
PF: predicated region fallthrough
CT: control target
= control target key end

     0   :  { %10 = vsyncpa [#allocation3], 0  ;;  %s1301_s0 = inlined_call_operand.vmem [shape: f32[2,16,21], index: 0, kind: input, shape index: {}]   ;;  %s1302_s1 = inlined_call_operand.vmem [shape: s32[2,16,4], index: 1, kind: input, shape index: {}]   ;;  %s1303_s2 = inlined_call_operand.hbm [shape: f32[21,128], index: 2, kind: input, shape index: {}]   ;;  %s1304_s3 = inlined_call_operand.hbm [shape: f32[76,128], index: 3, kind: input, shape index: {}]   ;;  %s1305_s4 = inlined_call_operand.hbm [shape: f32[16,128], index: 4, kind: input, shape index: {}]   ;;  %s1306_s5 = inlined_call_operand.hbm [shape: f32[2,16,128], index: 5, kind: output, shape index: {}]  }
   0x1   :  { %11 = vsyncpa [#allocation6], 0 }
   0x2   :  { %12 = vsyncpa [#allocation4], 0 }
   0x3   :  { %14 = vsyncpa [#allocation4 + $0x1], 0  ;;  %s1125_s18 = smov 0   ;;  %s1127_s19 = smov 0  }
   0x4   :  { %s1129_s20 = smov 0   ;;  %s1131_s21 = smov 0  }
   0x5   :  { %s1133_s22 = smov 0   ;;  %s1135_s23 = smov 0  }
   0x6 LB: > { %s734_s24 = sadd.s32 4294967295, %s1080_s23   ;;  %s735_s25 = sadd.s32 4294967294, %s1080_s23   ;;  %s1080_s23 = sphi %s1135_s23, %s20_s23   ;;  %s1076_s22 = sphi %s1133_s22, %s1317_s22   ;;  %s1072_s21 = sphi %s1131_s21, %s1316_s21   ;;  %s1068_s20 = sphi %s1129_s20, %s1315_s20   ;;  %s1064_s19 = sphi %s1127_s19, %s1314_s19   ;;  %s1060_s18 = sphi %s1125_s18, %s1313_s18  }
   0x7   : > { %s29_s26 = sadd.s32 1, %s1076_s22  ;;  %s165_s27 = sadd.s32 1, %s1068_s20 }
   0x8   : > { %p30_p0 = scmp.ge.s32.totalorder %s29_s26, 2  ;;  %p175_p1 = scmp.ne.s32.totalorder %s1068_s20, %s1064_s19 }
   0x9   : > { %p176_p2 = scmp.eq.s32.totalorder %s734_s24, 1  ;;  %p181_p3 = scmp.ne.s32.totalorder %s1064_s19, %s1060_s18 }
   0xa   : > { %s1319_s26 = smov (%p30_p0, %s29_s26), 0  ;;  %p182_p5 = scmp.eq.s32.totalorder %s735_s25, 1 }
   0xb   : > { %p1165_p4 = por %p176_p2, %p175_p1  ;;  %s160_s29 = ssub.s32 %s1076_s22, %s1319_s26 }
   0xc   : > { %p736_p6 = scmp.ge.s32.totalorder %s1080_s23, 1  ;;  %p163_p7 = scmp.eq.s32.totalorder %s160_s29, 0 }
   0xd   : > { %p1172_p8 = por %p182_p5, %p181_p3  ;;  %p189_p9 = scmp.lt.s32.totalorder %s1080_s23, 3 }
   0xe   : > { %s1178_s6 = scalar_select %p163_p7, %s1068_s20, %s165_s27  }
   0xf   : > { %s1308_s30 = scalar_select %p1172_p8, 1, 0 }
  0x10   : > { %p1180_p10 = pnand %p736_p6, %p189_p9  ;;  %p1184_p11 = scmp.eq.s32.totalorder %s734_s24, 0 }
  0x11   : > { %s1082_s9 = smov [#allocation5]   ;;  %s1083_s12 = smov [#allocation2]  }
  0x12   : > { %p829_p12 = pneg %p1180_p10  ;;  %s214_s10 = sshll.u32 %s1082_s9, 4  ;;  %s215_s10 = int_to_ptr.vmem [resolvable:$true] %s214_s10 }
  0x13   : > { %s201_s13 = sshll.u32 %s1083_s12, 4  ;;  %s929_s14 = scalar_lea.vmem %s215_s10, 1280  ;;  %s202_s13 = int_to_ptr.vmem [resolvable:$true] %s201_s13 }
  0x14   : > { %p1192_p13 = pnand %p1184_p11, %p829_p12  ;;  %p930_p1 = scmp.ne.s32.totalorder %s215_s10, %s929_s14 }
  0x15   : > { %p937_p5 = scmp.lt.s32.totalorder %s215_s10, %s215_s10  ;;  %p938_p6 = scmp.lt.s32.totalorder %s929_s14, %s929_s14 }
  0x16   : > { %p920_p0 = pneg %p1192_p13 }
  0x17   : > { %p939_p7 = por %p938_p6, %p937_p5 }
  0x18   : > { %p932_p2 = pnand %p930_p1, %p920_p0 }
  0x1a   : > { %p933_p3 = pneg %p932_p2 }
  0x1c   : > { %p940_p9 = pnand %p939_p7, %p933_p3 }
  0x1e   : > { %943 = shalt.err (!%p940_p9)
}
  0x1f   : > { %s1084_s15 = smov 128   ;;  %s1085_s16 = smov 8  }
  0x20   : > { %835 = dma.hbm_to_vmem [thread:$0]  (!%p1192_p13), %s1304_s3, 1280, %s215_s10, [#allocation6], %s1084_s15, %s1084_s15, %s1085_s16  }
  0x21   : > { %s955_s25 = scalar_lea.vmem %s202_s13, 384  ;;  %p963_p8 = scmp.lt.s32.totalorder %s202_s13, %s202_s13 }
  0x22   : > { %p956_p12 = scmp.ne.s32.totalorder %s202_s13, %s955_s25  ;;  %p964_p5 = scmp.lt.s32.totalorder %s955_s25, %s955_s25 }
  0x24   : > { %p958_p1 = pnand %p956_p12, %p920_p0  ;;  %p965_p3 = por %p964_p5, %p963_p8 }
  0x26   : > { %p959_p2 = pneg %p958_p1 }
  0x28   : > { %p966_p6 = pnand %p965_p3, %p959_p2 }
  0x2a   : > { %969 = shalt.err (!%p966_p6)
}
  0x2b   : > { %832 = dma.hbm_to_vmem [thread:$0]  (!%p1192_p13), %s1303_s2, 384, %s202_s13, [#allocation3], %s1084_s15, %s1084_s15, %s1085_s16  }
  0x2c   : > { %s1086_s9 = smov [#allocation7]  }
  0x2d   : > { %s230_s10 = sshll.u32 %s1086_s9, 4  ;;  %s231_s10 = int_to_ptr.vmem [resolvable:$true] %s230_s10 }
  0x2e   : > { %s981_s12 = scalar_lea.vmem %s231_s10, 256  ;;  %p989_p1 = scmp.lt.s32.totalorder %s231_s10, %s231_s10 }
  0x2f   : > { %p982_p7 = scmp.ne.s32.totalorder %s231_s10, %s981_s12  ;;  %p990_p8 = scmp.lt.s32.totalorder %s981_s12, %s981_s12 }
  0x31   : > { %p984_p9 = pnand %p982_p7, %p920_p0  ;;  %p991_p2 = por %p990_p8, %p989_p1 }
  0x33   : > { %p985_p12 = pneg %p984_p9 }
  0x35   : > { %p992_p5 = pnand %p991_p2, %p985_p12 }
  0x37   : > { %995 = shalt.err (!%p992_p5)
}
  0x38   : > { %838 = dma.hbm_to_vmem [thread:$0]  (!%p1192_p13), %s1305_s4, 256, %s231_s10, [#allocation6], %s1084_s15, %s1084_s15, %s1085_s16  }
  0x39   : > { %272 = sbr.rel (%p1180_p10) target bundleno = 431 (0x1af), region = 40 }
  0x3e   : > { %1047 = dma.done.wait (%p1184_p11), [#allocation3], 384  }
  0x3f   : > { %1049 = vsyncadd (%p1184_p11), [#allocation3], 4294966912 }
  0x40   : > { %1051 = dma.done.wait (%p1184_p11), [#allocation6], 1536  }
  0x41   : > { %1053 = vsyncadd (%p1184_p11), [#allocation6], 4294965760  ;;  %p322_p0 = scmp.lt.s32.totalorder %s1072_s21, 1  ;;  %v1087_v0 = vmov 0   ;;  %vm417_vm0 = vcmask 1043456   ;;  %v408_v4 = vld [vmem:[#allocation5 + $0x40] sm:$0xff]  ;;  %v350_v29 = vlaneseq }
  0x42   : > { %911 = vset.pattern.permute.xlu1 %v1087_v0  ;;  %910 = vset.pattern.permute.xlu0 %v1087_v0  ;;  %v409_v3 = vld [vmem:[#allocation5 + $0x48] sm:$0xf]  ;;  %v1088_v7 = vmov 1   ;;  %v407_v8 = vld [vmem:[#allocation5 + $0x38] sm:$0xff]  ;;  %v406_v11 = vld [vmem:[#allocation5 + $0x30] sm:$0xff]  ;;  %v1089_v12 = vmov 2  }
  0x43   : > { %s1234_s7 = scalar_select %p322_p0, %s1072_s21, 1  ;;  %783 = vmatprep.subr.msk.mxu0 %vm417_vm0, %v409_v3  ;;  %v405_v13 = vld [vmem:[#allocation5 + $0x28] sm:$0xff]  ;;  %v347_v14 = vld [vmem:[#allocation2 + $0x10] sm:$0x1f]  ;;  %vm503_vm1 = vcmask 1044480   ;;  %v346_v16 = vld [vmem:[#allocation2 + $0x8] sm:$0xff] }
  0x44   : > { %784 = vmatpush3.msk.msra.mxu0 %vm417_vm0, %v409_v3  ;;  %806 = vmatprep.subr.msk.mxu1 %vm503_vm1, %v347_v14  ;;  %v404_v17 = vld [vmem:[#allocation5 + $0x20] sm:$0xff]  ;;  %v1090_v18 = vmov 3   ;;  %v403_v19 = vld [vmem:[#allocation5 + $0x18] sm:$0xff]  ;;  %v345_v20 = vld [vmem:[#allocation2] sm:$0xff]  ;;  %vm496_vm2 = vcmask 171008   ;;  %v351_v31 = vand.u32 127, %v350_v29 }
  0x45   : > { %s763_s11 = sshll.u32 %s1234_s7, 4  ;;  %785 = vmatprep.subr.mxu0 %v408_v4  ;;  %807 = vmatpush3.msk.msra.mxu1 %vm503_vm1, %v347_v14  ;;  %v402_v22 = vld [vmem:[#allocation5 + $0x10] sm:$0xff]  ;;  %v401_v24 = vld [vmem:[#allocation5 + $0x8] sm:$0xff]  ;;  %v400_v26 = vld [vmem:[#allocation5] sm:$0xff]  ;;  %vm410_vm10 = vcmask 621568   ;;  %v1091_v36 = vmov 0.0  }
  0x46   : > { %s339_s16 = scalar_lea.vmem %s1302_s1, %s763_s11  ;;  %786 = vmatpush3.msra.mxu0 %v408_v4  ;;  %808 = vmatprep.subr.mxu1 %v346_v16  ;;  %s329_s25 = scalar_lea.vmem %s1301_s0, %s763_s11  ;;  %v583_v42 = vld [vmem:[#allocation7 + $0x8] sm:$0xff]  ;;  %v582_v46 = vld [vmem:[#allocation7] sm:$0xff] }
  0x47   : > { %v349_v1 = vld [vmem:[%s339_s16 + $0x8] sm:$0xff]  ;;  %v348_v2 = vld [vmem:[%s339_s16] sm:$0xff]  ;;  %787 = vmatprep.subr.mxu0 %v407_v8  ;;  %809 = vmatpush3.msra.mxu1 %v346_v16  ;;  %s318_s27 = sand.u32 1, %s1064_s19   ;;  %s765_s12 = sshll.u32 %s1072_s21, 8 }
  0x48   : > { %356 = vperm.xlu1 %911, %v349_v1   ;;  %353 = vperm.xlu0 %910, %v348_v2   ;;  %v361_v5 = vadd.s32 13, %v349_v1  ;;  %v360_v6 = vadd.s32 13, %v348_v2  ;;  %v372_v9 = vadd.s32 45, %v348_v2  ;;  %v373_v10 = vadd.s32 45, %v349_v1  ;;  %v343_v23 = vld [vmem:[%s329_s25] sm:$0xff]  ;;  %v344_v25 = vld [vmem:[%s329_s25 + $0x8] sm:$0xff]  ;;  %s1254_s7 = scalar_lea.hbm %s1306_s5, %s765_s12 }
  0x49   : > { %788 = vmatpush3.msra.mxu0 %v407_v8  ;;  %v384_v15 = vadd.s32 52, %v348_v2  ;;  %v385_v21 = vadd.s32 52, %v349_v1  ;;  %810 = vmatprep.subr.mxu1 %v345_v20  ;;  %s745_s29 = sshll.u32 %s318_s27, 4  ;;  %s1256_s11 = scalar_lea.sflag [#allocation4], %s318_s27 }
  0x4a   : > { %789 = vmatprep.subr.mxu0 %v406_v11  ;;  %811 = vmatpush3.msra.mxu1 %v345_v20  ;;  %s320_s9 = scalar_lea.vmem [#allocation8], %s745_s29  ;;  %s1092_s21 = smov [#allocation8]  }
  0x4b   : > { %790 = vmatpush3.msra.mxu0 %v406_v11  ;;  %812 = vmatprep.mubr.msk.f32.mxu1 %vm496_vm2, %v343_v23  ;;  %s604_s10 = sshll.u32 %s320_s9, 4  ;;  %s1000_s15 = sshll.u32 %s1092_s21, 4  ;;  %s1249_s10 = int_to_ptr.vmem [resolvable:$true] %s604_s10  ;;  %s1001_s15 = int_to_ptr.vmem [resolvable:$false] %s1000_s15 }
  0x4c   : > { %913 = vset.pattern.permute.xlu1 %v1088_v7  ;;  %912 = vset.pattern.permute.xlu0 %v1088_v7  ;;  %s996_s13 = scalar_lea.vmem %s1249_s10, 256  ;;  %s1002_s16 = scalar_lea.vmem %s1001_s15, 512 }
  0x4d   : > { %366 = vperm.xlu1 %913, %v361_v5   ;;  %363 = vperm.xlu0 %912, %v360_v6   ;;  %p997_p10 = scmp.ne.s32.totalorder %s1249_s10, %s996_s13  ;;  %p1003_p3 = scmp.lt.s32.totalorder %s1249_s10, %s1001_s15 }
  0x4e   : > { %791 = vmatprep.subr.mxu0 %v405_v13  ;;  %813 = vmatmul.mubr.msk.f32.vlgmr.msra.gmra.mxu1 %vm496_vm2, %v344_v25  ;;  %p1004_p6 = scmp.lt.s32.totalorder %s1002_s16, %s996_s13 }
  0x4f   : > { %792 = vmatpush3.msra.mxu0 %v405_v13  ;;  %p998_p11 = pnand %p997_p10, %p1165_p4 }
  0x50   : > { %793 = vmatprep.subr.mxu0 %v404_v17  ;;  %p1005_p7 = por %p1004_p6, %p1003_p3 }
  0x51   : > { %914 = vset.pattern.permute.xlu1 %v1089_v12  ;;  %915 = vset.pattern.permute.xlu0 %v1089_v12  ;;  %p999_p13 = pneg %p998_p11 }
  0x52   : > { %375 = vperm.xlu1 %914, %v372_v9   ;;  %378 = vperm.xlu0 %915, %v373_v10  }
  0x53   : > { %794 = vmatpush3.msra.mxu0 %v404_v17  ;;  %p1006_p9 = pnand %p1005_p7, %p999_p13 }
  0x54   : > { %795 = vmatprep.subr.mxu0 %v403_v19 }
  0x55   : > { %796 = vmatpush3.msra.mxu0 %v403_v19 }
  0x56   : > { %916 = vset.pattern.permute.xlu1 %v1090_v18  ;;  %797 = vmatprep.subr.mxu0 %v402_v22 }
  0x57   : > { %387 = vperm.xlu1 %916, %v384_v15   ;;  %798 = vmatpush3.msra.mxu0 %v402_v22 }
  0x58   : > { %799 = vmatprep.subr.mxu0 %v401_v24  ;;  %917 = vset.pattern.permute.xlu0 %v1090_v18 }
  0x59   : > { %800 = vmatpush3.msra.mxu0 %v401_v24 }
  0x5a   : > { %801 = vmatprep.subr.mxu0 %v400_v26 }
  0x5b   : > { %390 = vperm.xlu1 %916, %v385_v21   ;;  %802 = vmatpush3.msra.mxu0 %v400_v26 }
  0xc3   : > { %v357_v27 = vpop.permute.xlu1 %356  ;;  %v354_v28 = vpop.permute.xlu0 %353 }
  0xc4   : > { %vm358_vm3 = vcmp.eq.s32.totalorder %v351_v31, %v354_v28  ;;  %vm359_vm13 = vcmp.eq.s32.totalorder %v351_v31, %v357_v27 }
  0xc8   : > { %v367_v30 = vpop.permute.xlu1 %366  ;;  %v364_v32 = vpop.permute.xlu0 %363 }
  0xc9   : > { %vm368_vm4 = vcmp.eq.s32.totalorder %v351_v31, %v364_v32  ;;  %vm369_vm7 = vcmp.eq.s32.totalorder %v351_v31, %v367_v30 }
  0xca   : > { %vm370_vm5 = vmor %vm358_vm3, %vm368_vm4 }
  0xcb   : > { %vm371_vm14 = vmor %vm359_vm13, %vm369_vm7 }
  0xcd   : > { %v376_v33 = vpop.permute.xlu1 %375  ;;  %v379_v34 = vpop.permute.xlu0 %378 }
  0xce   : > { %vm380_vm6 = vcmp.eq.s32.totalorder %v351_v31, %v376_v33  ;;  %vm381_vm11 = vcmp.eq.s32.totalorder %v351_v31, %v379_v34 }
  0xcf   : > { %vm382_vm8 = vmor %vm370_vm5, %vm380_vm6 }
  0xd0   : > { %vm383_vm15 = vmor %vm371_vm14, %vm381_vm11 }
  0xd2   : > { %v388_v35 = vpop.permute.xlu1 %387 }
  0xd3   : > { %vm392_vm9 = vcmp.eq.s32.totalorder %v351_v31, %v388_v35 }
  0xd4   : > { %vm394_vm12 = vmor %vm382_vm8, %vm392_vm9 }
  0xd5   : > { %v750_v37 = vsel %vm394_vm12, 1.0, %v1091_v36 }
  0xd6   : > { %v391_v38 = vpop.permute.xlu1 %390  ;;  %803 = vmatprep.mubr.msk.f32.mxu0 %vm410_vm10, %v750_v37 }
  0xd7   : > { %vm393_vm0 = vcmp.eq.s32.totalorder %v351_v31, %v391_v38 }
  0xd8   : > { %vm395_vm1 = vmor %vm383_vm15, %vm393_vm0 }
  0xd9   : > { %v751_v39 = vsel %vm395_vm1, 1.0, %v1091_v36 }
  0xda   : > { %804 = vmatmul.mubr.msk.f32.vlgmr.msra.gmra.mxu0 %vm410_vm10, %v751_v39 }
 0x10e   : > { %v814_v40 = vpop.f32.mrf.mxu1 }
 0x110   : > { %v573_v44 = vpop.f32.mrf.mxu1 }
 0x19a   : > { %v805_v41 = vpop.f32.mrf.mxu0 }
 0x19b   : > { %v579_v43 = vadd.f32 %v814_v40, %v805_v41 }
 0x19c   : > { %v487_v45 = vpop.f32.mrf.mxu0 }
 0x19d   : > { %v585_v47 = vadd.f32 %v583_v42, %v579_v43  ;;  %v574_v48 = vadd.f32 %v573_v44, %v487_v45 }
 0x19f   : > { %587 = vst [vmem:[%s320_s9 + $0x8] sm:$0xff] %v585_v47  ;;  %v584_v49 = vadd.f32 %v582_v46, %v574_v48 }
 0x1a1   : > { %586 = vst [vmem:[%s320_s9] sm:$0xff] %v584_v49 }
 0x1a2   : > { %1009 = shalt.err (!%p1006_p9)
}
 0x1a3   : > { %s1010_s8 = scalar_lea.hbm %s1254_s7, 256  ;;  %s1014_s27 = scalar_lea.hbm %s1306_s5, 512 }
 0x1a4   : > { %p1011_p12 = scmp.ne.s32.totalorder %s1254_s7, %s1010_s8  ;;  %p1015_p2 = scmp.lt.s32.totalorder %s1254_s7, %s1306_s5 }
 0x1a5   : > { %p1016_p5 = scmp.lt.s32.totalorder %s1014_s27, %s1010_s8 }
 0x1a6   : > { %p1012_p1 = pnand %p1011_p12, %p1165_p4 }
 0x1a7   : > { %p1017_p0 = por %p1016_p5, %p1015_p2 }
 0x1a8   : > { %p1013_p8 = pneg %p1012_p1 }
 0x1aa   : > { %p1018_p10 = pnand %p1017_p0, %p1013_p8 }
 0x1ac   : > { %1021 = shalt.err (!%p1018_p10)
}
 0x1ad   : > { %s1093_s12 = smov 128   ;;  %s1094_s14 = smov 8  }
 0x1ae   : > { %827 = dma.vmem_to_hbm [thread:$0]  (%p1165_p4), %s1249_s10, 256, %s1254_s7, %s1256_s11, %s1093_s12, %s1093_s12, %s1094_s14  }
 0x1af PF: > { %p849_p11 = scmp.ge.s32.totalorder %s1080_s23, 2  ;;  %s619_s17 = sand.u32 1, %s1060_s18  }
 0x1b0   : > { %p1312_p13 = scmp.ne.s32.totalorder %s1308_s30, 0  ;;  %s620_s13 = scalar_lea.sflag [#allocation4], %s619_s17 }
 0x1b2   : > { %p840_p3 = pnand %p849_p11, %p1312_p13 }
 0x1b4   : > { %p841_p6 = pneg %p840_p3 }
 0x1b6   : > { %1055 = dma.done.wait (%p841_p6), %s620_s13, 256  }
 0x1b7   : > { %1057 = vsyncadd (%p841_p6), %s620_s13, 4294967040  ;;  %s20_s23 = sadd.s32 1, %s1080_s23   ;;  %s1313_s18 = smov %s1064_s19 }
 0x1b8   : > { %p17_p7 = scmp.ge.s32.totalorder %s20_s23, 4   ;;  %s1314_s19 = smov %s1068_s20 }
 0x1b9   : > { %s1315_s20 = smov %s1178_s6  ;;  %s1316_s21 = smov %s1076_s22 }
 0x1ba   : > { %s1317_s22 = smov %s1319_s26  ;;  %19 = sbr.rel (!%p17_p7) target bundleno = 6 (0x6), region = 92 }
 0x1bf   :  { %625 = vsyncpa [#allocation3], 1 }
 0x1c0   :  { %627 = vsyncpa [#allocation3 + $0x1], 1 }
 0x1c1   :  { %628 = vsyncpa [#allocation6], 1 }
 0x1c2   :  { %629 = vsyncpa [#allocation4], 1 }
 0x1c3   :  { %631 = vsyncpa [#allocation4 + $0x1], 1 }

</bundles_post_ra>
